<compile_context>
chip_gen: v7x
topology: tpu7x:2x2x1
jax: 0.10.0
libtpu: 0.0.40
codegen_flags: <defaults>
</compile_context>

<pallas_src>
import math

import jax
import jax.numpy as jnp
import numpy as np
from jax.experimental import pallas as pl
from jax.experimental.pallas import tpu as pltpu


def outer_product_kernel(f_ref, w2_ref, sel_ref, o_ref):
    # f_ref:   (TB, E)       f_sigma tile
    # w2_ref:  (E, P*E)      W2[m, p*E + e] = W[p, e, m]   (resident across grid)
    # sel_ref: (P*E, P)      block-diagonal ones: sel[p*E + e, q] = (p == q)
    # o_ref:   (TB, P)
    P = o_ref.shape[1]
    f = f_ref[...]                                                    # (TB, E) f32

    # One wide MXU matmul instead of P tiny (TB,E)x(E,E) ones.
    t = jnp.dot(f, w2_ref[...], preferred_element_type=jnp.float32)  # (TB, P*E)

    # Second f contraction: elementwise (VPU) multiply by f tiled across the P
    # segments, then a segmented sum over e via one matmul with the block-diag
    # ones matrix (stays on MXU; no XLU reductions, no in-kernel reshapes).
    f_tiled = jnp.concatenate([f] * P, axis=-1)                       # (TB, P*E)
    s = t * f_tiled                                                   # (TB, P*E)

    # Single lane-dense store of the whole output tile.
    o_ref[...] = jnp.dot(s, sel_ref[...], preferred_element_type=jnp.float32)


def _pick_batch_tile(B):
    # Big enough to fill MXU rows / amortize the ~0.35us per-grid-step overhead,
    # small enough that double-buffered (tb, E) / (tb, P*E) tiles stay far inside
    # every generation's scoped VMEM (incl. v7x's 64 MiB / 32 MiB-scoped).
    for cand in (1024, 512, 256, 128, 64, 32, 16, 8):
        if B >= cand and B % cand == 0:
            return cand
    return B


def outer_product(x, weights, *, batch_tile=None):
    """x: (B, F, E) float32, weights: (P, E, E) float32 -> (B, P) float32."""
    B, F, E = x.shape
    P = weights.shape[0]
    assert weights.shape == (P, E, E)

    # Field sum in the wrapper: trivial XLA reduction, gives the kernel dense
    # (TB, E) slabs instead of padded (F, E) per-row blocks.
    f_sigma = jnp.sum(x, axis=1)  # (B, E)

    # W2[m, p*E + e] = W[p, e, m] -- matches einsum 'rem,pem->rp' contraction
    # exactly (sum over m with f, then over e with f), so this stays correct
    # even for a non-symmetric bilinear generalization.
    w2 = jnp.transpose(weights, (2, 0, 1)).reshape(E, P * E)

    # Block-diagonal ones (P*E, P): reduces over e within each p-segment.
    sel = (jnp.repeat(jnp.arange(P), E)[:, None] == jnp.arange(P)[None, :]).astype(
        jnp.float32
    )

    tb = batch_tile if batch_tile is not None else _pick_batch_tile(B)
    assert B % tb == 0

    # NOTE: on v6e/v7x, casting f_sigma / w2 to bfloat16 here (keeping
    # preferred_element_type=f32 in the kernel) ~doubles MXU throughput and
    # halves VMEM pressure; kept in f32 for exact parity with the reference.
    return pl.pallas_call(
        outer_product_kernel,
        out_shape=jax.ShapeDtypeStruct((B, P), jnp.float32),
        grid_spec=pltpu.PrefetchScalarGridSpec(
            num_scalar_prefetch=0,
            grid=(B // tb,),
            in_specs=[
                pl.BlockSpec((tb, E), lambda i: (i, 0)),
                pl.BlockSpec((E, P * E), lambda i: (0, 0)),   # resident weights
                pl.BlockSpec((P * E, P), lambda i: (0, 0)),   # resident selector
            ],
            out_specs=pl.BlockSpec((tb, P), lambda i: (i, 0)),
        ),
        compiler_params=pltpu.CompilerParams(
            dimension_semantics=("parallel",),
        ),
    )(f_sigma, w2, sel)


def xavier_linear(key, shape):
    """Deterministic stand-in for torch xavier_uniform_ on a (P, E, E) tensor."""
    receptive = int(np.prod(shape[2:])) if len(shape) > 2 else 1
    fan_in = shape[1] * receptive
    fan_out = shape[0] * receptive
    bound = math.sqrt(6.0 / (fan_in + fan_out))
    return jax.random.uniform(key, shape, jnp.float32, minval=-bound, maxval=bound)


if __name__ == "__main__":
    key = jax.random.PRNGKey(0)
    k_x, k_w = jax.random.split(key)

    B, F, E, P = 16, 4, 32, 10  # batch, n_fields, embedding_size, output_size
    x = jax.random.normal(k_x, (B, F, E), jnp.float32)
    weights = xavier_linear(k_w, (P, E, E))

    # batch_tile=8 -> grid of 2 steps, exercising pipelining / parallel sharding.
    out = outer_product(x, weights, batch_tile=8)
    out = jax.block_until_ready(out)

    # Pure-JAX reference of the PyTorch forward.
    f_sigma = x.sum(axis=1)
    p_ref = jnp.einsum("re,rm->rem", f_sigma, f_sigma)
    ref = jnp.einsum("rem,pem->rp", p_ref, weights)
    np.testing.assert_allclose(np.asarray(out), np.asarray(ref), rtol=1e-5, atol=1e-5)

    print("KERNEL_OK")
</pallas_src>

<mosaic_0001>
module attributes {stable_mosaic.version = 11 : i64} {
  func.func @outer_product_kernel(%arg0: i32, %arg1: memref<8x32xf32, #tpu.memory_space<vmem>>, %arg2: memref<32x320xf32, #tpu.memory_space<vmem>>, %arg3: memref<320x10xf32, #tpu.memory_space<vmem>>, %arg4: memref<8x10xf32, #tpu.memory_space<vmem>>) attributes {dimension_semantics = [#tpu.dimension_semantics<parallel>], iteration_bounds = array<i64: 2>, scalar_prefetch = 0 : i64, scratch_operands = 0 : i64, tpu.core_type = #tpu.core_type<tc>, window_params = [{transform_indices = @transform_0, window_bounds = array<i64: 8, 32>}, {pipeline_mode = #tpu.pipeline_mode<synchronous>, transform_indices = @transform_1, window_bounds = array<i64: 32, 320>}, {pipeline_mode = #tpu.pipeline_mode<synchronous>, transform_indices = @transform_2, window_bounds = array<i64: 320, 10>}, {transform_indices = @transform_3, window_bounds = array<i64: 8, 10>}]} {
    %c0 = arith.constant 0 : index
    %c0_0 = arith.constant 0 : index
    %0 = vector.load %arg1[%c0, %c0_0] : memref<8x32xf32, #tpu.memory_space<vmem>>, vector<8x32xf32>
    %c0_1 = arith.constant 0 : index
    %c0_2 = arith.constant 0 : index
    %1 = vector.load %arg2[%c0_1, %c0_2] : memref<32x320xf32, #tpu.memory_space<vmem>>, vector<32x320xf32>
    %cst = arith.constant dense<0.000000e+00> : vector<8x320xf32>
    %2 = tpu.matmul %0, %1, %cst {dimension_numbers = #tpu.dot_dimension_numbers<[1], [0], [0], [1], [0, 0, 1, 1], [], []>} : vector<8x32xf32>, vector<32x320xf32>, vector<8x320xf32> -> vector<8x320xf32>
    %3 = tpu.concatenate %0, %0, %0, %0, %0, %0, %0, %0, %0, %0 in 1 : vector<8x32xf32>, vector<8x32xf32>, vector<8x32xf32>, vector<8x32xf32>, vector<8x32xf32>, vector<8x32xf32>, vector<8x32xf32>, vector<8x32xf32>, vector<8x32xf32>, vector<8x32xf32> -> vector<8x320xf32>
    %4 = arith.mulf %2, %3 : vector<8x320xf32>
    %c0_3 = arith.constant 0 : index
    %c0_4 = arith.constant 0 : index
    %5 = vector.load %arg3[%c0_3, %c0_4] : memref<320x10xf32, #tpu.memory_space<vmem>>, vector<320x10xf32>
    %cst_5 = arith.constant dense<0.000000e+00> : vector<8x10xf32>
    %6 = tpu.matmul %4, %5, %cst_5 {dimension_numbers = #tpu.dot_dimension_numbers<[1], [0], [0], [1], [0, 0, 1, 1], [], []>} : vector<8x320xf32>, vector<320x10xf32>, vector<8x10xf32> -> vector<8x10xf32>
    %c0_6 = arith.constant 0 : index
    %c0_7 = arith.constant 0 : index
    %7 = vector.load %arg4[%c0_6, %c0_7] : memref<8x10xf32, #tpu.memory_space<vmem>>, vector<8x10xf32>
    tpu.vector_store %arg4[%c0_6, %c0_7], %6 {strides = array<i32>} : memref<8x10xf32, #tpu.memory_space<vmem>>, vector<8x10xf32>,
    return
  }
  func.func @transform_0(%arg0: i32) -> (i32, i32) {
    %c0_i32 = arith.constant 0 : i32
    %c0_i32_0 = arith.constant 0 : i32
    return %arg0, %c0_i32 : i32, i32
  }
  func.func @transform_1(%arg0: i32) -> (i32, i32) {
    %c0_i32 = arith.constant 0 : i32
    %c0_i32_0 = arith.constant 0 : i32
    %c0_i32_1 = arith.constant 0 : i32
    return %c0_i32, %c0_i32_0 : i32, i32
  }
  func.func @transform_2(%arg0: i32) -> (i32, i32) {
    %c0_i32 = arith.constant 0 : i32
    %c0_i32_0 = arith.constant 0 : i32
    %c0_i32_1 = arith.constant 0 : i32
    return %c0_i32, %c0_i32_0 : i32, i32
  }
  func.func @transform_3(%arg0: i32) -> (i32, i32) {
    %c0_i32 = arith.constant 0 : i32
    %c0_i32_0 = arith.constant 0 : i32
    return %arg0, %c0_i32 : i32, i32
  }
}

</mosaic_0001>

<bundles_post_ra>
// kernel: tpu_custom_call.1
= control target key start
LH: loop header
LB: loop body
LE: loop exit
PB: predicated region body
PF: predicated region fallthrough
CT: control target
= control target key end

     0   :  { %8 = vsyncpa [#allocation3], 0  ;;  %s1163_s0 = inlined_call_operand.vmem [shape: f32[16,32], index: 0, kind: input, shape index: {}]   ;;  %s1164_s1 = inlined_call_operand.vmem [shape: f32[32,320], index: 1, kind: input, shape index: {}]   ;;  %s1165_s2 = inlined_call_operand.vmem [shape: f32[320,10], index: 2, kind: input, shape index: {}]   ;;  %s1166_s3 = inlined_call_operand.hbm [shape: f32[16,10], index: 3, kind: output, shape index: {}]  }
   0x1   :  { %10 = vsyncpa [#allocation3 + $0x1], 0  ;;  %s885_s12 = smov 0   ;;  %s887_s13 = smov 0  }
   0x2   :  { %s889_s14 = smov 0   ;;  %s891_s15 = smov 0  }
   0x3 LB: > { %s906_s16 = sadd.s32 4294967295, %s856_s15   ;;  %s599_s17 = sadd.s32 4294967294, %s856_s15   ;;  %s856_s15 = sphi %s891_s15, %s1172_s15   ;;  %s852_s14 = sphi %s889_s14, %s1171_s14   ;;  %s848_s13 = sphi %s887_s13, %s1170_s13   ;;  %s844_s12 = sphi %s885_s12, %s1169_s12  }
   0x4   : > { %s910_s18 = sadd.s32 1, %s856_s15   ;;  %s91_s19 = sadd.s32 1, %s852_s14 }
   0x5   : > { %s88_s20 = ssub.s32 %s856_s15, %s910_s18  ;;  %p101_p0 = scmp.ne.s32.totalorder %s852_s14, %s848_s13 }
   0x6   : > { %p89_p1 = scmp.eq.s32.totalorder %s88_s20, 0  ;;  %p102_p2 = scmp.eq.s32.totalorder %s906_s16, 1 }
   0x7   : > { %p107_p3 = scmp.ne.s32.totalorder %s848_s13, %s844_s12  ;;  %p108_p4 = scmp.eq.s32.totalorder %s599_s17, 1 }
   0x8   : > { %s921_s21 = scalar_select %p89_p1, %s852_s14, %s91_s19  }
   0x9   : > { %p923_p5 = por %p102_p2, %p101_p0  ;;  %p927_p6 = por %p108_p4, %p107_p3 }
   0xa   : > { %p602_p7 = scmp.ge.s32.totalorder %s856_s15, 1  ;;  %p139_p8 = scmp.lt.s32.totalorder %s856_s15, 3 }
   0xc   : > { %p140_p9 = pnand %p602_p7, %p139_p8 }
   0xd   : > { %v168_v0 = vld [vmem:[%s1164_s1 + $0x8] sm:$0xff] (!%p140_p9)  ;;  %v171_v1 = vld [vmem:[%s1164_s1 + $0x20] sm:$0xff] (!%p140_p9)  ;;  %p162_p10 = scmp.lt.s32.totalorder (!%p140_p9), %s906_s16, 1  ;;  %v170_v4 = vld [vmem:[%s1164_s1 + $0x18] sm:$0xff] (!%p140_p9)  ;;  %v858_v7 = vmov (!%p140_p9), 0.0   ;;  %s859_s29 = smov (!%p140_p9), 32  }
   0xe   : > { %143 = sbr.rel (%p140_p9) target bundleno = 477 (0x1dd), region = 32  ;;  %v167_v2 = vld [vmem:[%s1164_s1] sm:$0xff] (!%p140_p9)  ;;  %v691_v3 = vpack.c.bf16 (!%p140_p9), %v171_v1, %v168_v0  ;;  %v174_v5 = vld [vmem:[%s1164_s1 + $0x38] sm:$0xff] (!%p140_p9)  ;;  %v177_v6 = vld [vmem:[%s1164_s1 + $0x50] sm:$0xff] (!%p140_p9)  ;;  %247 = vmatprep.mubr.f32.mxu1 (!%p140_p9), %v858_v7  ;;  %s860_s30 = smov (!%p140_p9), 96   ;;  %vm179_vm0 = vcmask (!%p140_p9), 261120  }
   0xf   : > { %v693_v8 = vpack.c.bf16 (!%p140_p9), %v170_v4, %v167_v2  ;;  %v695_v9 = vpack.c.bf16 (!%p140_p9), %v177_v6, %v174_v5  ;;  %v173_v10 = vld [vmem:[%s1164_s1 + $0x30] sm:$0xff] (!%p140_p9)  ;;  %v176_v11 = vld [vmem:[%s1164_s1 + $0x48] sm:$0xff] (!%p140_p9)  ;;  %v357_v15 = vld [vmem:[%s1165_s2 + $0x80] sm:$0xff] (!%p140_p9)  ;;  %v861_v30 = vmov (!%p140_p9), 0.0|0.0   ;;  %s862_s25 = smov (!%p140_p9), 64   ;;  %vm863_vm1 = vmmov (!%p140_p9), 0  }
  0x10   : > { %692 = vmatprep.subr.bf16.mxu1 (!%p140_p9), %v691_v3  ;;  %v169_v12 = vld [vmem:[%s1164_s1 + $0x10] sm:$0xff] (!%p140_p9)  ;;  %v172_v13 = vld [vmem:[%s1164_s1 + $0x28] sm:$0xff] (!%p140_p9)  ;;  %v697_v14 = vpack.c.bf16 (!%p140_p9), %v176_v11, %v173_v10  ;;  %v341_v17 = vld [vmem:[%s1165_s2] sm:$0xff] (!%p140_p9)  ;;  %vm334_vm2 = vcmask (!%p140_p9), 523264   ;;  %vm336_vm3 = vcmask (!%p140_p9), 785408   ;;  %s159_s28 = sand.u32 (!%p140_p9), 1, %s848_s13  }
  0x11   : > { %694 = vmatpush1.bf16.msra.mxu1 (!%p140_p9), %v693_v8  ;;  %v358_v16 = vld [vmem:[%s1165_s2 + $0x88] sm:$0xff] (!%p140_p9)  ;;  %v359_v20 = vld [vmem:[%s1165_s2 + $0x90] sm:$0xff] (!%p140_p9)  ;;  %v360_v21 = vld [vmem:[%s1165_s2 + $0x98] sm:$0xff] (!%p140_p9)  ;;  %v700_v29 = vpack.c.bf16 (!%p140_p9), %v172_v13, %v169_v12  ;;  %vm524_vm4 = vcmask (!%p140_p9), 80896  }
  0x12   : > { %696 = vmatprep.subr.bf16.mxu1 (!%p140_p9), %v695_v9  ;;  %v705_v18 = vpack.c.bf16 (!%p140_p9), %v358_v16, %v357_v15  ;;  %v342_v19 = vld [vmem:[%s1165_s2 + $0x8] sm:$0xff] (!%p140_p9)  ;;  %v709_v24 = vpack.c.bf16 (!%p140_p9), %v360_v21, %v359_v20  ;;  %v343_v25 = vld [vmem:[%s1165_s2 + $0x10] sm:$0xff] (!%p140_p9)  ;;  %v344_v26 = vld [vmem:[%s1165_s2 + $0x18] sm:$0xff] (!%p140_p9) }
  0x13   : > { %v707_v23 = vpack.c.bf16 (!%p140_p9), %v342_v19, %v341_v17  ;;  %v361_v27 = vld [vmem:[%s1165_s2 + $0xa0] sm:$0xff] (!%p140_p9)  ;;  %v362_v28 = vld [vmem:[%s1165_s2 + $0xa8] sm:$0xff] (!%p140_p9)  ;;  %v178_v32 = vld [vmem:[%s1164_s1 + $0x58] sm:$0xff] (!%p140_p9)  ;;  %v711_v33 = vpack.c.bf16 (!%p140_p9), %v344_v26, %v343_v25 }
  0x14   : > { %706 = vmatprep.subr.bf16.mxu0 (!%p140_p9), %v705_v18  ;;  %v175_v31 = vld [vmem:[%s1164_s1 + $0x40] sm:$0xff] (!%p140_p9)  ;;  %v713_v34 = vpack.c.bf16 (!%p140_p9), %v362_v28, %v361_v27  ;;  %v346_v36 = vld [vmem:[%s1165_s2 + $0x28] sm:$0xff] (!%p140_p9)  ;;  %v363_v37 = vld [vmem:[%s1165_s2 + $0xb0] sm:$0xff] (!%p140_p9) }
  0x15   : > { %s163_s19 = scalar_select %p162_p10, %s906_s16, 1  ;;  %698 = vmatpush1.bf16.msra.mxu1 %v697_v14  ;;  %708 = vmatpush3.bf16.msra.mxu0 %v707_v23  ;;  %v345_v35 = vld [vmem:[%s1165_s2 + $0x20] sm:$0xff]  ;;  %v364_v38 = vld [vmem:[%s1165_s2 + $0xb8] sm:$0xff]  ;;  %v703_v39 = vpack.c.bf16 %v178_v32, %v175_v31  ;;  %v374_v42 = vld [vmem:[%s1165_s2 + $0x108] sm:$0xff] }
  0x16   : > { %699 = vmatprep.subr.bf16.mxu1 %v861_v30  ;;  %710 = vmatprep.subr.bf16.mxu0 %v709_v24  ;;  %v715_v40 = vpack.c.bf16 %v346_v36, %v345_v35  ;;  %v373_v41 = vld [vmem:[%s1165_s2 + $0x100] sm:$0xff]  ;;  %v717_v43 = vpack.c.bf16 %v364_v38, %v363_v37  ;;  %v347_v44 = vld [vmem:[%s1165_s2 + $0x30] sm:$0xff]  ;;  %v348_v45 = vld [vmem:[%s1165_s2 + $0x38] sm:$0xff] }
  0x17   : > { %s604_s27 = sshll.u32 %s163_s19, 3  ;;  %v365_v46 = vld [vmem:[%s1165_s2 + $0xc0] sm:$0xff]  ;;  %v366_v47 = vld [vmem:[%s1165_s2 + $0xc8] sm:$0xff]  ;;  %v738_v48 = vpack.c.bf16 %v374_v42, %v373_v41  ;;  %v719_v49 = vpack.c.bf16 %v348_v45, %v347_v44  ;;  %v367_v53 = vld [vmem:[%s1165_s2 + $0xd0] sm:$0xff] }
  0x18   : > { %s165_s9 = scalar_lea.vmem %s1163_s0, %s604_s27  ;;  %v721_v50 = vpack.c.bf16 %v366_v47, %v365_v46  ;;  %v349_v51 = vld [vmem:[%s1165_s2 + $0x40] sm:$0xff]  ;;  %v350_v52 = vld [vmem:[%s1165_s2 + $0x48] sm:$0xff]  ;;  %v368_v54 = vld [vmem:[%s1165_s2 + $0xd8] sm:$0xff] }
  0x19   : > { %v987_v22 = vld [vmem:[%s165_s9] sm:$0xff]  ;;  %712 = vmatpush3.bf16.msra.mxu0 %v711_v33  ;;  %v723_v55 = vpack.c.bf16 %v350_v52, %v349_v51  ;;  %v725_v56 = vpack.c.bf16 %v368_v54, %v367_v53  ;;  %v351_v57 = vld [vmem:[%s1165_s2 + $0x50] sm:$0xff]  ;;  %v352_v58 = vld [vmem:[%s1165_s2 + $0x58] sm:$0xff]  ;;  %s527_s9 = scalar_lea.sflag [#allocation3], %s159_s28 }
  0x1a   : > { %324 = vrot.lane.b32.xlu0 %v987_v22, %s859_s29  ;;  %330 = vrot.lane.b32.xlu1 %v987_v22, %s860_s30  ;;  %v369_v59 = vld [vmem:[%s1165_s2 + $0xe0] sm:$0xff]  ;;  %v370_v60 = vld [vmem:[%s1165_s2 + $0xe8] sm:$0xff]  ;;  %v727_v61 = vpack.c.bf16 %v352_v58, %v351_v57  ;;  %s603_s29 = sshll.u32 %s159_s28, 3  ;;  %s609_s30 = sshll.u32 %s906_s16, 7 }
  0x1b   : > { %605 = vmatmul.mubr.msk.f32.vlgmr.msra.gmra.mrb[0].mxu1 %vm179_vm0, %v987_v22  ;;  %714 = vmatprep.subr.bf16.mxu0 %v713_v34  ;;  %v729_v62 = vpack.c.bf16 %v370_v60, %v369_v59  ;;  %v353_v63 = vld [vmem:[%s1165_s2 + $0x60] sm:$0xff]  ;;  %v354_v0 = vld [vmem:[%s1165_s2 + $0x68] sm:$0xff]  ;;  %v375_v2 = vld [vmem:[%s1165_s2 + $0x110] sm:$0xff]  ;;  %s161_s4 = scalar_lea.vmem [#allocation2], %s603_s29  ;;  %s1121_s8 = scalar_lea.hbm %s1166_s3, %s609_s30 }
  0x1c   : > { %701 = vmatpush3.bf16.msra.mxu1 %v700_v29  ;;  %669 = vmatprep.mubr.msk.f32.mxu1 %vm863_vm1, %v858_v7  ;;  %v731_v1 = vpack.c.bf16 %v354_v0, %v353_v63  ;;  %v376_v3 = vld [vmem:[%s1165_s2 + $0x118] sm:$0xff]  ;;  %v371_v5 = vld [vmem:[%s1165_s2 + $0xf0] sm:$0xff]  ;;  %v377_v11 = vld [vmem:[%s1165_s2 + $0x120] sm:$0xff]  ;;  %s540_s5 = sshll.u32 %s161_s4, 4  ;;  %s864_s16 = smov [#allocation2]   ;;  %s1123_s5 = int_to_ptr.vmem [resolvable:$true] %s540_s5 }
  0x1d   : > { %702 = vmatprep.subr.bf16.mxu1 %v861_v30  ;;  %716 = vmatpush3.bf16.msra.mxu0 %v715_v40  ;;  %v741_v4 = vpack.c.bf16 %v376_v3, %v375_v2  ;;  %v372_v6 = vld [vmem:[%s1165_s2 + $0xf8] sm:$0xff]  ;;  %v355_v8 = vld [vmem:[%s1165_s2 + $0x70] sm:$0xff]  ;;  %v378_v12 = vld [vmem:[%s1165_s2 + $0x128] sm:$0xff]  ;;  %s794_s10 = scalar_lea.vmem %s1123_s5, 128  ;;  %s798_s11 = sshll.u32 %s864_s16, 4  ;;  %s799_s11 = int_to_ptr.vmem [resolvable:$false] %s798_s11 }
  0x1e   : > { %327 = vrot.lane.b32.xlu0 %v987_v22, %s862_s25  ;;  %718 = vmatprep.subr.bf16.mxu0 %v717_v43  ;;  %v356_v9 = vld [vmem:[%s1165_s2 + $0x78] sm:$0xff]  ;;  %v744_v13 = vpack.c.bf16 %v378_v12, %v377_v11  ;;  %v379_v14 = vld [vmem:[%s1165_s2 + $0x130] sm:$0xff]  ;;  %p795_p11 = scmp.ne.s32.totalorder %s1123_s5, %s794_s10  ;;  %s800_s17 = scalar_lea.vmem %s799_s11, 256 }
  0x1f   : > { %v735_v10 = vpack.c.bf16 %v356_v9, %v355_v8  ;;  %v380_v15 = vld [vmem:[%s1165_s2 + $0x138] sm:$0xff]  ;;  %p801_p0 = scmp.lt.s32.totalorder %s1123_s5, %s799_s11  ;;  %p802_p1 = scmp.lt.s32.totalorder %s800_s17, %s794_s10 }
  0x20   : > { %704 = vmatpush3.bf16.msra.mxu1 %v703_v39  ;;  %v747_v16 = vpack.c.bf16 %v380_v15, %v379_v14  ;;  %p796_p12 = pnand %p795_p11, %p923_p5 }
  0x21   : > { %737 = vmatprep.subr.bf16.mxu1 %v861_v30  ;;  %720 = vmatpush3.bf16.msra.mxu0 %v719_v49  ;;  %p803_p2 = por %p802_p1, %p801_p0 }
  0x22   : > { %722 = vmatprep.subr.bf16.mxu0 %v721_v50  ;;  %p797_p13 = pneg %p796_p12 }
  0x23   : > { %670 = vmatmul.mubr.msk.f32.vlgmr.msra.gmra.mrb[2].mxu1 %vm179_vm0, %v987_v22 }
  0x24   : > { %739 = vmatpush3.bf16.msra.mxu1 %v738_v48  ;;  %688 = vmatprep.mubr.msk.f32.mxu1 %vm863_vm1, %v858_v7  ;;  %v733_v7 = vpack.c.bf16 %v372_v6, %v371_v5  ;;  %p804_p3 = pnand %p803_p2, %p797_p13 }
  0x25   : > { %740 = vmatprep.subr.bf16.mxu1 %v861_v30  ;;  %724 = vmatpush3.bf16.msra.mxu0 %v723_v55 }
  0x26   : > { %726 = vmatprep.subr.bf16.mxu0 %v725_v56 }
  0x28   : > { %742 = vmatpush3.bf16.msra.mxu1 %v741_v4 }
  0x29   : > { %728 = vmatpush3.bf16.msra.mxu0 %v727_v61  ;;  %743 = vmatprep.subr.bf16.mxu1 %v861_v30 }
  0x2a   : > { %730 = vmatprep.subr.bf16.mxu0 %v729_v62 }
  0x2c   : > { %745 = vmatpush3.bf16.msra.mxu1 %v744_v13 }
  0x2d   : > { %732 = vmatpush3.bf16.msra.mxu0 %v731_v1  ;;  %746 = vmatprep.subr.bf16.mxu1 %v861_v30 }
  0x2e   : > { %734 = vmatprep.subr.bf16.mxu0 %v733_v7 }
  0x30   : > { %748 = vmatpush3.bf16.msra.mxu1 %v747_v16 }
  0x31   : > { %736 = vmatpush3.bf16.msra.mxu0 %v735_v10 }
  0x8c   : > { %v325_v17 = vpop.permute.xlu0 %324  ;;  %v331_v21 = vpop.permute.xlu1 %330 }
  0x8d   : > { %v333_v18 = vsel %vm179_vm0, %v987_v22, %v325_v17 }
  0x90   : > { %v328_v19 = vpop.permute.xlu0 %327 }
  0x91   : > { %v335_v20 = vsel %vm334_vm2, %v333_v18, %v328_v19 }
  0x92   : > { %v337_v23 = vsel %vm336_vm3, %v335_v20, %v331_v21 }
  0xee   : > { %v249_v24 = vpop.f32.mrb[0].mxu1 }
  0xef   : > { %v338_v25 = vmul.f32 %v337_v23, %v249_v24  ;;  %v251_v26 = vpop.f32.mrb[1].mxu1 }
  0xf0   : > { %v339_v27 = vmul.f32 %v337_v23, %v251_v26 }
  0xf2   : > { %448 = vmatprep.mubr.f32.mxu0 %v339_v27 }
  0xf3   : > { %449 = vmatmul.mubr.f32.vlgmr.msra.gmra.mrb[0].mxu0 %v338_v25 }
  0xf6   : > { %v320_v28 = vpop.f32.mrb[2].mxu1 }
  0xf7   : > { %v340_v29 = vmul.f32 %v333_v18, %v320_v28  ;;  %v671_v30 = vpop.f32.mrb[3].mxu1 }
  0xf9   : > { %689 = vmatmul.mubr.msk.f32.vlgmr.msra.gmra.mrb[4].mxu1 %vm334_vm2, %v340_v29 }
 0x1c6   : > { %v649_v22 = vpop.f32.mrb[0].mxu0 }
 0x1c7   : > { %v650_v31 = vpop.f32.mrb[1].mxu0 }
 0x1c8   : > { %v651_v32 = vadd.f32 %v650_v31, %v649_v22 }
 0x1cc   : > { %v520_v33 = vpop.f32.mrb[4].mxu1 }
 0x1cd   : > { %v521_v34 = vadd.f32 %v651_v32, %v520_v33  ;;  %v690_v35 = vpop.f32.mrb[5].mxu1 }
 0x1cf   : > { %525 = vst.msk [vmem:[%s161_s4] sm:$0xff] %vm524_vm4, %v521_v34 }
 0x1d0   : > { %807 = shalt.err (!%p804_p3)
}
 0x1d1   : > { %s808_s19 = scalar_lea.hbm %s1121_s8, 128  ;;  %s812_s25 = scalar_lea.hbm %s1166_s3, 256 }
 0x1d2   : > { %p809_p4 = scmp.ne.s32.totalorder %s1121_s8, %s808_s19  ;;  %p813_p9 = scmp.lt.u32.totalorder %s1121_s8, %s1166_s3 }
 0x1d3   : > { %p814_p10 = scmp.lt.u32.totalorder %s812_s25, %s808_s19  ;;  %p816_p12 = scmp.lt.u32.totalorder %s808_s19, %s1121_s8 }
 0x1d4   : > { %p810_p7 = pnand %p809_p4, %p923_p5 }
 0x1d5   : > { %p815_p11 = por %p814_p10, %p813_p9 }
 0x1d6   : > { %p811_p8 = pneg %p810_p7 }
 0x1d7   : > { %p817_p13 = por %p816_p12, %p815_p11 }
 0x1d9   : > { %p818_p0 = pnand %p817_p13, %p811_p8 }
 0x1db   : > { %821 = shalt.err (!%p818_p0)
}
 0x1dc   : > { %749 = dma.vmem_to_hbm [thread:$0]  (%p923_p5), %s1123_s5, 128, %s1121_s8, %s527_s9  }
 0x1dd PF: > { %p755_p1 = scmp.ge.s32.totalorder %s856_s15, 2  ;;  %s552_s28 = sand.u32 1, %s844_s12  }
 0x1de   : > { %s553_s29 = scalar_lea.sflag [#allocation3], %s552_s28 }
 0x1df   : > { %p752_p2 = pnand %p755_p1, %p927_p6 }
 0x1e1   : > { %839 = dma.done.wait (!%p752_p2), %s553_s29, 128  }
 0x1e2   : > { %841 = vsyncadd (!%p752_p2), %s553_s29, 4294967168  ;;  %p13_p3 = scmp.ge.s32.totalorder %s910_s18, 4   ;;  %s1169_s12 = smov %s848_s13 }
 0x1e3   : > { %s1170_s13 = smov %s852_s14  ;;  %s1171_s14 = smov %s921_s21 }
 0x1e4   : > { %s1172_s15 = smov %s910_s18  ;;  %15 = sbr.rel (!%p13_p3) target bundleno = 3 (0x3), region = 67 }
 0x1eb   :  { %558 = vsyncpa [#allocation3], 1 }
 0x1ec   :  { %560 = vsyncpa [#allocation3 + $0x1], 1 }

</bundles_post_ra>
